<compile_context>
chip_gen: v7x
topology: tpu7x:2x2x1
jax: 0.10.0
libtpu: 0.0.40
codegen_flags: <defaults>
</compile_context>

<pallas_src>
import functools

import jax
import jax.numpy as jnp
from jax.experimental import pallas as pl
from jax.experimental.pallas import tpu as pltpu


def _term_agent_kernel(ids_ref, cand2d_ref, table_ref, misc_ref,
                       selp_ref, selid_ref, *,
                       kernel_size, n_batch, lq, lc, pad, sample_size):
    """Fused TermAgent eval forward.

    ids_ref   : (Lq*P + B*Lc, 1) int32  query ids (time-major, P-padded rows,
                                        pad rows = -1) followed by candidate
                                        ids (batch-major).
    cand2d_ref: (B, Lc) int32           candidate ids, lane-dense (for the
                                        fused top-k id gather).
    table_ref : (V, (K+1)*QE) bf16      folded gather table:
                                        [emb@conv_w[k] for k] ++ [emb@w1_c].
    misc_ref  : (QE+3, QE) f32          rows 0:QE = w1_q, QE = conv_b,
                                        QE+1 = b1, QE+2 = w2.
    selp_ref  : (B, sample) f32         top-k candidate probabilities.
    selid_ref : (B, sample) int32       corresponding candidate term ids.
    """
    K = kernel_size
    B = n_batch
    Lq, Lc, P, S = lq, lc, pad, sample_size
    R = ids_ref.shape[0]
    V = table_ref.shape[0]
    QE = misc_ref.shape[1]
    Lout = Lq - K + 1
    QROWS = Lq * P

    # ---- single fused gather matmul: one-hot(ids) @ folded table ----
    iota_v = jax.lax.broadcasted_iota(jnp.int32, (R, V), 1)
    onehot = (ids_ref[...] == iota_v).astype(jnp.float32).astype(jnp.bfloat16)
    gathered = jnp.dot(onehot, table_ref[...],
                       preferred_element_type=jnp.float32)            # (R, (K+1)*QE)

    misc = misc_ref[...]                                               # (QE+3, QE)
    w1q_bf = misc[0:QE, :].astype(jnp.bfloat16)
    conv_b = misc[QE:QE + 1, :]
    b1 = misc[QE + 1:QE + 2, :]
    w2_bf = misc[QE + 2:QE + 3, :].astype(jnp.bfloat16)

    # ---- Conv1d(valid): pre-folded taps -> 8-aligned shift-add over sublanes ----
    conv_acc = gathered[0:Lout * P, 0:QE]
    for k in range(1, K):
        conv_acc = conv_acc + gathered[k * P:(k + Lout) * P, k * QE:(k + 1) * QE]

    # ---- global max pool over time (aligned P-row blocks); bias+ReLU hoisted
    #      out of the max (exact: both are monotone) ----
    pooled = conv_acc[0:P, :]
    for t in range(1, Lout):
        pooled = jnp.maximum(pooled, conv_acc[t * P:(t + 1) * P, :])
    query_embed = jnp.maximum(pooled + conv_b, 0.0)                    # (P, QE); rows >= B are pad

    # ---- Linear1: query block (+ bias); candidate block was folded into table ----
    part_q = jnp.dot(query_embed.astype(jnp.bfloat16), w1q_bf,
                     preferred_element_type=jnp.float32) + b1          # (P, QE)
    part_q_exp = jnp.concatenate(
        [jnp.broadcast_to(part_q[b:b + 1, :], (Lc, QE)) for b in range(B)],
        axis=0)                                                        # (B*Lc, QE)
    cand_part = gathered[QROWS:QROWS + B * Lc, K * QE:(K + 1) * QE]    # (B*Lc, QE)
    h = jnp.tanh(cand_part + part_q_exp)

    # ---- Linear2 (no bias): one lane-dense score row, stacked per batch ----
    score_row = jax.lax.dot_general(
        w2_bf, h.astype(jnp.bfloat16), (((1,), (1,)), ((), ())),
        preferred_element_type=jnp.float32)                            # (1, B*Lc)
    scores = jnp.concatenate(
        [score_row[:, b * Lc:(b + 1) * Lc] for b in range(B)], axis=0)  # (B, Lc)

    # ---- softmax over candidates (PyTorch Softmax(dim=1)) ----
    m = jnp.max(scores, axis=-1, keepdims=True)
    e = jnp.exp(scores - m)
    probs = e * pl.reciprocal(jnp.sum(e, axis=-1, keepdims=True), approx=True)

    # ---- fused top-k + candidate-id gather (eval path of sample_action) ----
    # iterative lane argmax + mask; reductions done in f32 (ids exact < 2**24).
    lane_f = jax.lax.broadcasted_iota(jnp.int32, (B, Lc), 1).astype(jnp.float32)
    cand_f = cand2d_ref[...].astype(jnp.float32)
    work = probs
    top_p, top_id = [], []
    for _ in range(S):
        mv = jnp.max(work, axis=-1, keepdims=True)                     # (B, 1)
        idx = jnp.min(jnp.where(work == mv, lane_f, jnp.float32(Lc)),
                      axis=-1, keepdims=True)                          # first max lane
        hit = lane_f == idx
        top_p.append(mv)
        top_id.append(jnp.sum(jnp.where(hit, cand_f, 0.0),
                              axis=-1, keepdims=True))
        work = jnp.where(hit, jnp.float32(-1.0), work)
    selp_ref[...] = jnp.concatenate(top_p, axis=1)                     # (B, S)
    selid_ref[...] = jnp.concatenate(top_id, axis=1).astype(jnp.int32)  # (B, S)


def prepare_params(params, kernel_size):
    """Offline (un-jitted, once per checkpoint) fold of the embedding table."""
    emb = params["embedding"].astype(jnp.float32)                      # (V, WE)
    conv_tabs = [emb @ params["conv_w"][k] for k in range(kernel_size)]  # K x (V, QE)
    cand_tab = emb @ params["w1_c"]                                    # (V, QE)
    gather_table = jnp.concatenate(conv_tabs + [cand_tab],
                                   axis=1).astype(jnp.bfloat16)        # (V, (K+1)*QE)
    misc = jnp.concatenate(
        [params["w1_q"], params["conv_b"], params["b1"], params["w2_row"]],
        axis=0).astype(jnp.float32)                                    # (QE+3, QE)
    return {"gather_table": gather_table, "misc": misc}


def _term_agent_forward(prep, query_ids, cand_ids, *, sample_size, kernel_size):
    """Eval-mode TermAgent.forward: returns (select_probs, expand_idx, 0)."""
    B, Lq = query_ids.shape
    _, Lc = cand_ids.shape
    assert Lq >= kernel_size, "query length must be >= conv kernel size"

    # Query ids time-major, padded to a multiple of 8 rows per time step so the
    # in-kernel conv / pool sublane slices are all 8-aligned. Pad ids are -1
    # (match nothing -> zero one-hot row -> zero contribution).
    P = ((B + 7) // 8) * 8
    q_t = query_ids.T.astype(jnp.int32)                                # (Lq, B)
    if P > B:
        q_t = jnp.concatenate(
            [q_t, jnp.full((Lq, P - B), -1, jnp.int32)], axis=1)       # (Lq, P)
    ids_col = jnp.concatenate(
        [q_t.reshape(Lq * P, 1),
         cand_ids.reshape(B * Lc, 1).astype(jnp.int32)], axis=0)       # (Lq*P + B*Lc, 1)

    vmem = pl.BlockSpec(memory_space=pltpu.MemorySpace.VMEM)
    kern = functools.partial(
        _term_agent_kernel, kernel_size=kernel_size, n_batch=B, lq=Lq, lc=Lc,
        pad=P, sample_size=sample_size)
    select_probs, expand_idx = pl.pallas_call(
        kern,
        out_shape=(jax.ShapeDtypeStruct((B, sample_size), jnp.float32),
                   jax.ShapeDtypeStruct((B, sample_size), jnp.int32)),
        in_specs=[vmem] * 4,
        out_specs=(vmem, vmem),
    )(ids_col, cand_ids.astype(jnp.int32), prep["gather_table"], prep["misc"])
    return select_probs, expand_idx, 0


term_agent_forward = jax.jit(_term_agent_forward,
                             static_argnames=("sample_size", "kernel_size"))


def _reference_topk_probs(params, query_ids, cand_ids, kernel_size, sample_size):
    """Pure-JAX f32 reference (same assumed CNN1D), for a loose sanity check."""
    emb = params["embedding"]
    q_emb = emb[query_ids]                                             # (B, Lq, WE)
    c_emb = emb[cand_ids]                                              # (B, Lc, WE)
    K = kernel_size
    Lout = query_ids.shape[1] - K + 1
    conv = jnp.stack(
        [sum(q_emb[:, t + k, :] @ params["conv_w"][k] for k in range(K))
         for t in range(Lout)], axis=1)                                # (B, Lout, QE)
    conv = jax.nn.relu(conv + params["conv_b"][0])
    query_embed = jnp.max(conv, axis=1)                                # (B, QE)
    part_q = query_embed @ params["w1_q"] + params["b1"][0]
    h = jnp.tanh(part_q[:, None, :] + c_emb @ params["w1_c"])
    scores = jnp.einsum("blq,q->bl", h, params["w2_row"][0])
    probs = jax.nn.softmax(scores, axis=-1)
    vals, _ = jax.lax.top_k(probs, sample_size)
    return vals


if __name__ == "__main__":
    # Small config consistent with the module.
    B, Lq, Lc = 2, 8, 16
    VOCAB, WE, QE = 50, 32, 32
    K, SAMPLE = 3, 4            # pool_size_q == Lq - K + 1 == 6 (global pool)

    key = jax.random.PRNGKey(0)
    (k_q, k_c, k_emb, k_cw, k_cb, k_w1q, k_w1c, k_b1, k_w2) = jax.random.split(key, 9)

    query_ids = jax.random.randint(k_q, (B, Lq), 1, VOCAB, dtype=jnp.int32)
    cand_ids = jax.random.randint(k_c, (B, Lc), 0, VOCAB, dtype=jnp.int32)

    # Deterministic synthetic parameters (shapes from __init__; no checkpoint load).
    # conv_w is the Conv1d weight stored per-tap as (K, WE, QE); w1_q / w1_c are
    # the column blocks of Linear1's (transposed) weight; w2_row is Linear2's
    # native PyTorch (1, QE) weight.
    params = {
        "embedding": 0.1 * jax.random.normal(k_emb, (VOCAB, WE), jnp.float32),
        "conv_w":    0.1 * jax.random.normal(k_cw, (K, WE, QE), jnp.float32),
        "conv_b":    0.1 * jax.random.normal(k_cb, (1, QE), jnp.float32),
        "w1_q":      0.1 * jax.random.normal(k_w1q, (QE, QE), jnp.float32),
        "w1_c":      0.1 * jax.random.normal(k_w1c, (WE, QE), jnp.float32),
        "b1":        0.1 * jax.random.normal(k_b1, (1, QE), jnp.float32),
        "w2_row":    0.1 * jax.random.normal(k_w2, (1, QE), jnp.float32),
    }

    prep = prepare_params(params, K)   # one-time offline fold (outside jit)

    select_probs, expand_idx, baseline = term_agent_forward(
        prep, query_ids, cand_ids, sample_size=SAMPLE, kernel_size=K)
    jax.block_until_ready((select_probs, expand_idx))

    assert select_probs.shape == (B, SAMPLE)
    assert expand_idx.shape == (B, SAMPLE)
    assert bool(jnp.all(jnp.isfinite(select_probs)))
    assert bool(jnp.all((select_probs >= 0.0) & (select_probs <= 1.0)))
    # top-k values are sorted descending
    assert bool(jnp.all(select_probs[:, :-1] >= select_probs[:, 1:]))
    # every returned id is one of that batch's candidate ids
    member = jnp.any(expand_idx[:, :, None] == cand_ids[:, None, :], axis=-1)
    assert bool(jnp.all(member))
    # loose numerical check vs fp32 reference (kernel uses bf16 MXU + approx recip)
    ref_vals = _reference_topk_probs(params, query_ids, cand_ids, K, SAMPLE)
    assert bool(jnp.allclose(select_probs, ref_vals, atol=2e-2, rtol=5e-2))

    print("KERNEL_OK")
</pallas_src>

<mosaic_0001>
module attributes {stable_mosaic.version = 11 : i64} {
  func.func @_term_agent_kernel(%arg0: memref<96x1xi32, #tpu.memory_space<vmem>>, %arg1: memref<2x16xi32, #tpu.memory_space<vmem>>, %arg2: memref<50x128xbf16, #tpu.memory_space<vmem>>, %arg3: memref<35x32xf32, #tpu.memory_space<vmem>>, %arg4: memref<2x4xf32, #tpu.memory_space<vmem>>, %arg5: memref<2x4xi32, #tpu.memory_space<vmem>>) attributes {dimension_semantics = [], scalar_prefetch = 0 : i64, scratch_operands = 0 : i64, tpu.core_type = #tpu.core_type<tc>} {
    %0 = tpu.iota {dimensions = array<i32: 1>} : vector<96x50xi32>
    %c0 = arith.constant 0 : index
    %c0_0 = arith.constant 0 : index
    %1 = vector.load %arg0[%c0, %c0_0] : memref<96x1xi32, #tpu.memory_space<vmem>>, vector<96x1xi32>
    %2 = vector.broadcast %1 : vector<96x1xi32> to vector<96x50xi32>
    %3 = arith.cmpi eq, %2, %0 : vector<96x50xi32>
    %4 = arith.extui %3 : vector<96x50xi1> to vector<96x50xi32>
    %5 = arith.sitofp %4 : vector<96x50xi32> to vector<96x50xf32>
    %6 = arith.truncf %5 : vector<96x50xf32> to vector<96x50xbf16>
    %c0_1 = arith.constant 0 : index
    %c0_2 = arith.constant 0 : index
    %7 = vector.load %arg2[%c0_1, %c0_2] : memref<50x128xbf16, #tpu.memory_space<vmem>>, vector<50x128xbf16>
    %cst = arith.constant dense<0.000000e+00> : vector<96x128xf32>
    %8 = tpu.matmul %6, %7, %cst {dimension_numbers = #tpu.dot_dimension_numbers<[1], [0], [0], [1], [0, 0, 1, 1], [], []>} : vector<96x50xbf16>, vector<50x128xbf16>, vector<96x128xf32> -> vector<96x128xf32>
    %c0_3 = arith.constant 0 : index
    %c0_4 = arith.constant 0 : index
    %9 = vector.load %arg3[%c0_3, %c0_4] : memref<35x32xf32, #tpu.memory_space<vmem>>, vector<35x32xf32>
    %10 = vector.extract_strided_slice %9 {offsets = [0, 0], sizes = [32, 32], strides = [1, 1]} : vector<35x32xf32> to vector<32x32xf32>
    %11 = arith.truncf %10 : vector<32x32xf32> to vector<32x32xbf16>
    %12 = vector.extract_strided_slice %9 {offsets = [32, 0], sizes = [1, 32], strides = [1, 1]} : vector<35x32xf32> to vector<1x32xf32>
    %13 = vector.extract_strided_slice %9 {offsets = [33, 0], sizes = [1, 32], strides = [1, 1]} : vector<35x32xf32> to vector<1x32xf32>
    %14 = vector.extract_strided_slice %9 {offsets = [34, 0], sizes = [1, 32], strides = [1, 1]} : vector<35x32xf32> to vector<1x32xf32>
    %15 = arith.truncf %14 : vector<1x32xf32> to vector<1x32xbf16>
    %16 = vector.extract_strided_slice %8 {offsets = [0, 0], sizes = [48, 32], strides = [1, 1]} : vector<96x128xf32> to vector<48x32xf32>
    %17 = vector.extract_strided_slice %8 {offsets = [8, 32], sizes = [48, 32], strides = [1, 1]} : vector<96x128xf32> to vector<48x32xf32>
    %18 = arith.addf %16, %17 : vector<48x32xf32>
    %19 = vector.extract_strided_slice %8 {offsets = [16, 64], sizes = [48, 32], strides = [1, 1]} : vector<96x128xf32> to vector<48x32xf32>
    %20 = arith.addf %18, %19 : vector<48x32xf32>
    %21 = vector.extract_strided_slice %20 {offsets = [0, 0], sizes = [8, 32], strides = [1, 1]} : vector<48x32xf32> to vector<8x32xf32>
    %22 = vector.extract_strided_slice %20 {offsets = [8, 0], sizes = [8, 32], strides = [1, 1]} : vector<48x32xf32> to vector<8x32xf32>
    %23 = arith.maximumf %21, %22 : vector<8x32xf32>
    %24 = vector.extract_strided_slice %20 {offsets = [16, 0], sizes = [8, 32], strides = [1, 1]} : vector<48x32xf32> to vector<8x32xf32>
    %25 = arith.maximumf %23, %24 : vector<8x32xf32>
    %26 = vector.extract_strided_slice %20 {offsets = [24, 0], sizes = [8, 32], strides = [1, 1]} : vector<48x32xf32> to vector<8x32xf32>
    %27 = arith.maximumf %25, %26 : vector<8x32xf32>
    %28 = vector.extract_strided_slice %20 {offsets = [32, 0], sizes = [8, 32], strides = [1, 1]} : vector<48x32xf32> to vector<8x32xf32>
    %29 = arith.maximumf %27, %28 : vector<8x32xf32>
    %30 = vector.extract_strided_slice %20 {offsets = [40, 0], sizes = [8, 32], strides = [1, 1]} : vector<48x32xf32> to vector<8x32xf32>
    %31 = arith.maximumf %29, %30 : vector<8x32xf32>
    %32 = vector.broadcast %12 : vector<1x32xf32> to vector<8x32xf32>
    %33 = arith.addf %31, %32 : vector<8x32xf32>
    %cst_5 = arith.constant 0.000000e+00 : f32
    %34 = vector.broadcast %cst_5 : f32 to vector<8x32xf32>
    %35 = arith.maximumf %33, %34 : vector<8x32xf32>
    %36 = arith.truncf %35 : vector<8x32xf32> to vector<8x32xbf16>
    %cst_6 = arith.constant dense<0.000000e+00> : vector<8x32xf32>
    %37 = tpu.matmul %36, %11, %cst_6 {dimension_numbers = #tpu.dot_dimension_numbers<[1], [0], [0], [1], [0, 0, 1, 1], [], []>} : vector<8x32xbf16>, vector<32x32xbf16>, vector<8x32xf32> -> vector<8x32xf32>
    %38 = vector.broadcast %13 : vector<1x32xf32> to vector<8x32xf32>
    %39 = arith.addf %37, %38 : vector<8x32xf32>
    %40 = vector.extract_strided_slice %39 {offsets = [0, 0], sizes = [1, 32], strides = [1, 1]} : vector<8x32xf32> to vector<1x32xf32>
    %41 = vector.shape_cast %40 : vector<1x32xf32> to vector<1x32xf32>
    %42 = vector.broadcast %41 : vector<1x32xf32> to vector<16x32xf32>
    %43 = vector.extract_strided_slice %39 {offsets = [1, 0], sizes = [1, 32], strides = [1, 1]} : vector<8x32xf32> to vector<1x32xf32>
    %44 = vector.shape_cast %43 : vector<1x32xf32> to vector<1x32xf32>
    %45 = vector.broadcast %44 : vector<1x32xf32> to vector<16x32xf32>
    %46 = tpu.concatenate %42, %45 in 0 : vector<16x32xf32>, vector<16x32xf32> -> vector<32x32xf32>
    %47 = vector.extract_strided_slice %8 {offsets = [64, 96], sizes = [32, 32], strides = [1, 1]} : vector<96x128xf32> to vector<32x32xf32>
    %48 = arith.addf %47, %46 : vector<32x32xf32>
    %49 = math.tanh %48 : vector<32x32xf32>
    %50 = arith.truncf %49 : vector<32x32xf32> to vector<32x32xbf16>
    %cst_7 = arith.constant dense<0.000000e+00> : vector<1x32xf32>
    %51 = tpu.matmul %15, %50, %cst_7 {dimension_numbers = #tpu.dot_dimension_numbers<[1], [1], [0], [0], [0, 0, 1, 0], [], []>} : vector<1x32xbf16>, vector<32x32xbf16>, vector<1x32xf32> -> vector<1x32xf32>
    %52 = vector.extract_strided_slice %51 {offsets = [0, 0], sizes = [1, 16], strides = [1, 1]} : vector<1x32xf32> to vector<1x16xf32>
    %53 = vector.extract_strided_slice %51 {offsets = [0, 16], sizes = [1, 16], strides = [1, 1]} : vector<1x32xf32> to vector<1x16xf32>
    %54 = tpu.concatenate %52, %53 in 0 : vector<1x16xf32>, vector<1x16xf32> -> vector<2x16xf32>
    %cst_8 = arith.constant dense<0xFF800000> : vector<2xf32>
    %55 = vector.multi_reduction <maximumf>, %54, %cst_8 [1] : vector<2x16xf32> to vector<2xf32>
    %56 = vector.shape_cast %55 : vector<2xf32> to vector<2x1xf32>
    %57 = vector.broadcast %56 : vector<2x1xf32> to vector<2x16xf32>
    %58 = arith.subf %54, %57 : vector<2x16xf32>
    %59 = math.exp %58 : vector<2x16xf32>
    %cst_9 = arith.constant dense<0.000000e+00> : vector<2xf32>
    %60 = vector.multi_reduction <add>, %59, %cst_9 [1] : vector<2x16xf32> to vector<2xf32>
    %61 = vector.shape_cast %60 : vector<2xf32> to vector<2x1xf32>
    %62 = tpu.reciprocal %61 {approx = true} : vector<2x1xf32> -> vector<2x1xf32>
    %63 = vector.broadcast %62 : vector<2x1xf32> to vector<2x16xf32>
    %64 = arith.mulf %59, %63 : vector<2x16xf32>
    %65 = tpu.iota {dimensions = array<i32: 1>} : vector<2x16xi32>
    %66 = arith.sitofp %65 : vector<2x16xi32> to vector<2x16xf32>
    %c0_10 = arith.constant 0 : index
    %c0_11 = arith.constant 0 : index
    %67 = vector.load %arg1[%c0_10, %c0_11] : memref<2x16xi32, #tpu.memory_space<vmem>>, vector<2x16xi32>
    %68 = arith.sitofp %67 : vector<2x16xi32> to vector<2x16xf32>
    %cst_12 = arith.constant dense<0xFF800000> : vector<2xf32>
    %69 = vector.multi_reduction <maximumf>, %64, %cst_12 [1] : vector<2x16xf32> to vector<2xf32>
    %70 = vector.shape_cast %69 : vector<2xf32> to vector<2x1xf32>
    %71 = vector.broadcast %70 : vector<2x1xf32> to vector<2x16xf32>
    %72 = arith.cmpf oeq, %64, %71 : vector<2x16xf32>
    %cst_13 = arith.constant 1.600000e+01 : f32
    %73 = vector.broadcast %cst_13 : f32 to vector<2x16xf32>
    %74 = arith.select %72, %66, %73 : vector<2x16xi1>, vector<2x16xf32>
    %cst_14 = arith.constant dense<0x7F800000> : vector<2xf32>
    %75 = vector.multi_reduction <minimumf>, %74, %cst_14 [1] : vector<2x16xf32> to vector<2xf32>
    %76 = vector.shape_cast %75 : vector<2xf32> to vector<2x1xf32>
    %77 = vector.broadcast %76 : vector<2x1xf32> to vector<2x16xf32>
    %78 = arith.cmpf oeq, %66, %77 : vector<2x16xf32>
    %cst_15 = arith.constant 0.000000e+00 : f32
    %79 = vector.broadcast %cst_15 : f32 to vector<2x16xf32>
    %80 = arith.select %78, %68, %79 : vector<2x16xi1>, vector<2x16xf32>
    %cst_16 = arith.constant dense<0.000000e+00> : vector<2xf32>
    %81 = vector.multi_reduction <add>, %80, %cst_16 [1] : vector<2x16xf32> to vector<2xf32>
    %82 = vector.shape_cast %81 : vector<2xf32> to vector<2x1xf32>
    %cst_17 = arith.constant -1.000000e+00 : f32
    %83 = vector.broadcast %cst_17 : f32 to vector<2x16xf32>
    %84 = arith.select %78, %83, %64 : vector<2x16xi1>, vector<2x16xf32>
    %cst_18 = arith.constant dense<0xFF800000> : vector<2xf32>
    %85 = vector.multi_reduction <maximumf>, %84, %cst_18 [1] : vector<2x16xf32> to vector<2xf32>
    %86 = vector.shape_cast %85 : vector<2xf32> to vector<2x1xf32>
    %87 = vector.broadcast %86 : vector<2x1xf32> to vector<2x16xf32>
    %88 = arith.cmpf oeq, %84, %87 : vector<2x16xf32>
    %cst_19 = arith.constant 1.600000e+01 : f32
    %89 = vector.broadcast %cst_19 : f32 to vector<2x16xf32>
    %90 = arith.select %88, %66, %89 : vector<2x16xi1>, vector<2x16xf32>
    %cst_20 = arith.constant dense<0x7F800000> : vector<2xf32>
    %91 = vector.multi_reduction <minimumf>, %90, %cst_20 [1] : vector<2x16xf32> to vector<2xf32>
    %92 = vector.shape_cast %91 : vector<2xf32> to vector<2x1xf32>
    %93 = vector.broadcast %92 : vector<2x1xf32> to vector<2x16xf32>
    %94 = arith.cmpf oeq, %66, %93 : vector<2x16xf32>
    %cst_21 = arith.constant 0.000000e+00 : f32
    %95 = vector.broadcast %cst_21 : f32 to vector<2x16xf32>
    %96 = arith.select %94, %68, %95 : vector<2x16xi1>, vector<2x16xf32>
    %cst_22 = arith.constant dense<0.000000e+00> : vector<2xf32>
    %97 = vector.multi_reduction <add>, %96, %cst_22 [1] : vector<2x16xf32> to vector<2xf32>
    %98 = vector.shape_cast %97 : vector<2xf32> to vector<2x1xf32>
    %cst_23 = arith.constant -1.000000e+00 : f32
    %99 = vector.broadcast %cst_23 : f32 to vector<2x16xf32>
    %100 = arith.select %94, %99, %84 : vector<2x16xi1>, vector<2x16xf32>
    %cst_24 = arith.constant dense<0xFF800000> : vector<2xf32>
    %101 = vector.multi_reduction <maximumf>, %100, %cst_24 [1] : vector<2x16xf32> to vector<2xf32>
    %102 = vector.shape_cast %101 : vector<2xf32> to vector<2x1xf32>
    %103 = vector.broadcast %102 : vector<2x1xf32> to vector<2x16xf32>
    %104 = arith.cmpf oeq, %100, %103 : vector<2x16xf32>
    %cst_25 = arith.constant 1.600000e+01 : f32
    %105 = vector.broadcast %cst_25 : f32 to vector<2x16xf32>
    %106 = arith.select %104, %66, %105 : vector<2x16xi1>, vector<2x16xf32>
    %cst_26 = arith.constant dense<0x7F800000> : vector<2xf32>
    %107 = vector.multi_reduction <minimumf>, %106, %cst_26 [1] : vector<2x16xf32> to vector<2xf32>
    %108 = vector.shape_cast %107 : vector<2xf32> to vector<2x1xf32>
    %109 = vector.broadcast %108 : vector<2x1xf32> to vector<2x16xf32>
    %110 = arith.cmpf oeq, %66, %109 : vector<2x16xf32>
    %cst_27 = arith.constant 0.000000e+00 : f32
    %111 = vector.broadcast %cst_27 : f32 to vector<2x16xf32>
    %112 = arith.select %110, %68, %111 : vector<2x16xi1>, vector<2x16xf32>
    %cst_28 = arith.constant dense<0.000000e+00> : vector<2xf32>
    %113 = vector.multi_reduction <add>, %112, %cst_28 [1] : vector<2x16xf32> to vector<2xf32>
    %114 = vector.shape_cast %113 : vector<2xf32> to vector<2x1xf32>
    %cst_29 = arith.constant -1.000000e+00 : f32
    %115 = vector.broadcast %cst_29 : f32 to vector<2x16xf32>
    %116 = arith.select %110, %115, %100 : vector<2x16xi1>, vector<2x16xf32>
    %cst_30 = arith.constant dense<0xFF800000> : vector<2xf32>
    %117 = vector.multi_reduction <maximumf>, %116, %cst_30 [1] : vector<2x16xf32> to vector<2xf32>
    %118 = vector.shape_cast %117 : vector<2xf32> to vector<2x1xf32>
    %119 = vector.broadcast %118 : vector<2x1xf32> to vector<2x16xf32>
    %120 = arith.cmpf oeq, %116, %119 : vector<2x16xf32>
    %cst_31 = arith.constant 1.600000e+01 : f32
    %121 = vector.broadcast %cst_31 : f32 to vector<2x16xf32>
    %122 = arith.select %120, %66, %121 : vector<2x16xi1>, vector<2x16xf32>
    %cst_32 = arith.constant dense<0x7F800000> : vector<2xf32>
    %123 = vector.multi_reduction <minimumf>, %122, %cst_32 [1] : vector<2x16xf32> to vector<2xf32>
    %124 = vector.shape_cast %123 : vector<2xf32> to vector<2x1xf32>
    %125 = vector.broadcast %124 : vector<2x1xf32> to vector<2x16xf32>
    %126 = arith.cmpf oeq, %66, %125 : vector<2x16xf32>
    %cst_33 = arith.constant 0.000000e+00 : f32
    %127 = vector.broadcast %cst_33 : f32 to vector<2x16xf32>
    %128 = arith.select %126, %68, %127 : vector<2x16xi1>, vector<2x16xf32>
    %cst_34 = arith.constant dense<0.000000e+00> : vector<2xf32>
    %129 = vector.multi_reduction <add>, %128, %cst_34 [1] : vector<2x16xf32> to vector<2xf32>
    %130 = vector.shape_cast %129 : vector<2xf32> to vector<2x1xf32>
    %131 = tpu.concatenate %70, %86, %102, %118 in 1 : vector<2x1xf32>, vector<2x1xf32>, vector<2x1xf32>, vector<2x1xf32> -> vector<2x4xf32>
    %c0_35 = arith.constant 0 : index
    %c0_36 = arith.constant 0 : index
    %132 = vector.load %arg4[%c0_35, %c0_36] : memref<2x4xf32, #tpu.memory_space<vmem>>, vector<2x4xf32>
    tpu.vector_store %arg4[%c0_35, %c0_36], %131 {strides = array<i32>} : memref<2x4xf32, #tpu.memory_space<vmem>>, vector<2x4xf32>,
    %133 = tpu.concatenate %82, %98, %114, %130 in 1 : vector<2x1xf32>, vector<2x1xf32>, vector<2x1xf32>, vector<2x1xf32> -> vector<2x4xf32>
    %134 = arith.fptosi %133 : vector<2x4xf32> to vector<2x4xi32>
    %c0_37 = arith.constant 0 : index
    %c0_38 = arith.constant 0 : index
    %135 = vector.load %arg5[%c0_37, %c0_38] : memref<2x4xi32, #tpu.memory_space<vmem>>, vector<2x4xi32>
    tpu.vector_store %arg5[%c0_37, %c0_38], %134 {strides = array<i32>} : memref<2x4xi32, #tpu.memory_space<vmem>>, vector<2x4xi32>,
    return
  }
}

</mosaic_0001>

<bundles_post_ra>
// kernel: _term_agent_forward.1
= control target key start
LH: loop header
LB: loop body
LE: loop exit
PB: predicated region body
PF: predicated region fallthrough
CT: control target
= control target key end

     0   :  { %11 = vsyncpa [#allocation3], 0  ;;  %v723_v2 = vmov 0   ;;  %v724_v6 = vmov 0.0   ;;  %s942_s0 = inlined_call_operand.vmem [shape: s32[96,1], index: 0, kind: input, shape index: {}]   ;;  %s943_s1 = inlined_call_operand.vmem [shape: s32[2,16], index: 1, kind: input, shape index: {}]   ;;  %s944_s2 = inlined_call_operand.vmem [shape: bf16[50,128], index: 2, kind: input, shape index: {}]   ;;  %s945_s3 = inlined_call_operand.vmem [shape: f32[35,32], index: 3, kind: input, shape index: {}]   ;;  %s946_s4 = inlined_call_operand.hbm [shape: f32[2,4], index: 4, kind: output, shape index: {0}]   ;;  %s947_s5 = inlined_call_operand.hbm [shape: s32[2,4], index: 5, kind: output, shape index: {1}]  }
   0x1   :  { %v26_v0 = vld [vmem:[%s942_s0 + $0x10] sm:$0xff]  ;;  %v24_v1 = vld [vmem:[%s942_s0] sm:$0xff]  ;;  %658 = vset.pattern.permute.xlu1 %v723_v2  ;;  %657 = vset.pattern.permute.xlu0 %v723_v2  ;;  %v27_v3 = vld [vmem:[%s942_s0 + $0x18] sm:$0xff] }
   0x2   :  { %43 = vperm.xlu1 %658, %v26_v0   ;;  %37 = vperm.xlu0 %657, %v24_v1   ;;  %v25_v4 = vld [vmem:[%s942_s0 + $0x8] sm:$0xff]  ;;  %v659_v5 = vld [vmem:[%s944_s2] sm:$0xff]  }
   0x3   :  { %629 = vmatprep.subr.bf16.mxu1 %v724_v6  ;;  %v660_v7 = vld [vmem:[%s944_s2 + $0x8] sm:$0xff]   ;;  %609 = vmatprep.subr.bf16.mxu0 %v659_v5 }
   0x6   :  { %46 = vperm.xlu1 %658, %v27_v3   ;;  %40 = vperm.xlu0 %657, %v25_v4  }
   0x7   :  { %12 = vsyncpa [#allocation5], 0  ;;  %v29_v8 = vld [vmem:[%s942_s0 + $0x28] sm:$0xff]  ;;  %v28_v9 = vld [vmem:[%s942_s0 + $0x20] sm:$0xff]  ;;  %610 = vmatpush3.bf16.msra.mxu0 %v659_v5  ;;  %vm161_vm0 = vcmask 1040384   ;;  %v22_v15 = vlaneseq  ;;  %vm142_vm5 = vcmask 408576  }
   0x8   :  { %611 = vmatprep.subr.bf16.mxu0 %v660_v7  ;;  %v661_v10 = vld [vmem:[%s944_s2 + $0x10] sm:$0xff]   ;;  %v31_v11 = vld [vmem:[%s942_s0 + $0x38] sm:$0xff]  ;;  %s726_s17 = smov 64   ;;  %v246_v45 = vld [vmem:[%s945_s3] sm:$0xff]  ;;  %vm727_vm10 = vmmov 0   ;;  %vm325_vm11 = vcmask 261120  }
   0x9   :  { %v30_v12 = vld [vmem:[%s942_s0 + $0x30] sm:$0xff]  ;;  %v662_v13 = vld [vmem:[%s944_s2 + $0x18] ss:$0 sps:$4 sm:$0x11]   ;;  %v802_v16 = vand.u32 127, %v22_v15  ;;  %s725_s2 = smov 96   ;;  %633 = vmatprep.mubr.msk.bf16.mxu1 %vm727_vm10, %v724_v6 }
   0xa   :  { %52 = vperm.xlu1 %658, %v29_v8   ;;  %49 = vperm.xlu0 %657, %v28_v9   ;;  %v163_v14 = vsel %vm161_vm0, %v662_v13, 0  ;;  %v247_v46 = vld [vmem:[%s945_s3 + $0x8] sm:$0xff]  ;;  %v248_v48 = vld [vmem:[%s945_s3 + $0x10] sm:$0xff]  ;;  %v249_v49 = vld [vmem:[%s945_s3 + $0x18] sm:$0xff]  ;;  %s729_s10 = smov 112  }
   0xb   :  { %612 = vmatpush3.bf16.msra.mxu0 %v660_v7  ;;  %v251_v47 = vpack.c.bf16 %v247_v46, %v246_v45  ;;  %v252_v50 = vpack.c.bf16 %v249_v49, %v248_v48  ;;  %v33_v51 = vld [vmem:[%s942_s0 + $0x48] sm:$0xff]  ;;  %v32_v52 = vld [vmem:[%s942_s0 + $0x40] sm:$0xff]  ;;  %v35_v53 = vld [vmem:[%s942_s0 + $0x58] sm:$0xff] }
   0xc   :  { %613 = vmatprep.subr.bf16.mxu0 %v661_v10  ;;  %v34_v54 = vld [vmem:[%s942_s0 + $0x50] sm:$0xff] }
   0xd   :  { %630 = vmatpush3.bf16.msra.mxu1 %v251_v47 }
   0xe   :  { %58 = vperm.xlu1 %658, %v31_v11   ;;  %55 = vperm.xlu0 %657, %v30_v12  }
   0xf   :  { %614 = vmatpush3.bf16.msra.mxu0 %v661_v10  ;;  %631 = vmatprep.subr.bf16.mxu1 %v724_v6  ;;  %v315_v10 = vshrl.u32 %v22_v15, 7 }
  0x10   :  { %645 = vmatprep.subr.msk.bf16.mxu0 %vm161_vm0, %v662_v13 }
  0x11   :  { %632 = vmatpush3.bf16.msra.mxu1 %v252_v50 }
  0x12   :  { %637 = vmatprep.subr.bf16.mxu1 %v724_v6 }
  0x13   :  { %616 = vmatpush3.bf16.msra.mxu0 %v163_v14 }
  0x81   :  { %v44_v17 = vpop.permute.xlu1 %43  ;;  %v38_v18 = vpop.permute.xlu0 %37 }
  0x82   :  { %vm74_vm1 = vcmp.eq.s32.totalorder %v44_v17, %v802_v16  ;;  %vm72_vm2 = vcmp.eq.s32.totalorder %v38_v18, %v802_v16  ;;  %v316_v17 = vsub.s32 0, %v315_v10 }
  0x83   :  { %v571_v21 = vsel %vm74_vm1, 1.0, %v724_v6  ;;  %v569_v22 = vsel %vm72_vm2, 1.0, %v724_v6  ;;  %vm458_vm1 = vcmask 123904  }
  0x85   :  { %v47_v19 = vpop.permute.xlu1 %46  ;;  %v41_v20 = vpop.permute.xlu0 %40 }
  0x86   :  { %vm75_vm3 = vcmp.eq.s32.totalorder %v47_v19, %v802_v16  ;;  %vm73_vm4 = vcmp.eq.s32.totalorder %v41_v20, %v802_v16  ;;  %v862_v19 = vld [vmem:[%s945_s3 + $0x20] sm:$0x7]  ;;  %s728_s3 = smov 32  }
  0x87   :  { %v572_v23 = vsel %vm75_vm3, 1.0, %v724_v6  ;;  %v570_v24 = vsel %vm73_vm4, 1.0, %v724_v6 }
  0x88   :  { %v109_v25 = vpack.c.bf16 %v572_v23, %v571_v21  ;;  %v108_v26 = vpack.c.bf16 %v570_v24, %v569_v22  ;;  %v317_v24 = vrot.slane %v862_v19, %v316_v17 }
  0x89   :  { %v53_v27 = vpop.permute.xlu1 %52  ;;  %v50_v28 = vpop.permute.xlu0 %49 }
  0x8a   :  { %vm77_vm6 = vcmp.eq.s32.totalorder %v53_v27, %v802_v16  ;;  %vm76_vm7 = vcmp.eq.s32.totalorder %v50_v28, %v802_v16  ;;  %617 = vmatprep.mubr.msk.bf16.mxu0 %vm142_vm5, %v108_v26 }
  0x8b   :  { %v574_v29 = vsel %vm77_vm6, 1.0, %v724_v6  ;;  %v573_v30 = vsel %vm76_vm7, 1.0, %v724_v6  ;;  %618 = vmatmul.mubr.msk.bf16.vlgmr.msra.gmra.mrb[0].mxu0 %vm142_vm5, %v109_v25  ;;  %vm528_vm7 = vcmask 7168  }
  0x8c   :  { %v110_v31 = vpack.c.bf16 %v574_v29, %v573_v30 }
  0x8d   :  { %v59_v32 = vpop.permute.xlu1 %58  ;;  %v56_v33 = vpop.permute.xlu0 %55 }
  0x8e   :  { %vm79_vm8 = vcmp.eq.s32.totalorder %v59_v32, %v802_v16  ;;  %vm78_vm9 = vcmp.eq.s32.totalorder %v56_v33, %v802_v16  ;;  %621 = vmatprep.mubr.msk.bf16.mxu0 %vm142_vm5, %v110_v31 }
  0x8f   :  { %v576_v34 = vsel %vm79_vm8, 1.0, %v724_v6  ;;  %v575_v35 = vsel %vm78_vm9, 1.0, %v724_v6  ;;  %vm530_vm8 = vcmask 15360   ;;  %vm532_vm9 = vcmask 23552  }
  0x90   :  { %v111_v36 = vpack.c.bf16 %v576_v34, %v575_v35 }
  0x93   :  { %622 = vmatmul.mubr.msk.bf16.gmra.mrb[4].mxu0 %vm142_vm5, %v111_v36 }
 0x15e   :  { %v619_v37 = vpop.f32.mrb[0].mxu0 }
 0x15f   :  { %262 = vrot.lane.b32.xlu1 %v619_v37, %s725_s2  ;;  %v199_v38 = vpop.f32.mrb[1].mxu0 }
 0x160   :  { %v620_v39 = vpop.f32.mrb[2].mxu0 }
 0x161   :  { %264 = vrot.lane.b32.xlu0 %v620_v39, %s725_s2  ;;  %v202_v40 = vpop.f32.mrb[3].mxu0 }
 0x163   :  { %285 = vrot.lane.b32.xlu1 %v619_v37, %s726_s17 }
 0x165   :  { %287 = vrot.lane.b32.xlu0 %v620_v39, %s726_s17 }
 0x166   :  { %v623_v41 = vpop.f32.mrb[4].mxu0 }
 0x167   :  { %270 = vrot.lane.b32.xlu1 %v623_v41, %s725_s2  ;;  %v215_v42 = vpop.f32.mrb[5].mxu0 }
 0x168   :  { %v624_v43 = vpop.f32.mrb[6].mxu0 }
 0x169   :  { %260 = vrot.lane.b32.xlu0 %v202_v40, %s725_s2  ;;  %v218_v44 = vpop.f32.mrb[7].mxu0 }
 0x16b   :  { %266 = vrot.lane.b32.xlu1 %v215_v42, %s725_s2 }
 0x16d   :  { %289 = vrot.lane.b32.xlu0 %v215_v42, %s726_s17 }
 0x16f   :  { %268 = vrot.lane.b32.xlu1 %v218_v44, %s725_s2 }
 0x171   :  { %291 = vrot.lane.b32.xlu0 %v218_v44, %s726_s17 }
 0x173   :  { %295 = vrot.lane.b32.xlu1 %v624_v43, %s726_s17 }
 0x175   :  { %293 = vrot.lane.b32.xlu0 %v623_v41, %s726_s17 }
 0x177   :  { %64 = vperm.xlu1 %658, %v33_v51  }
 0x179   :  { %61 = vperm.xlu0 %657, %v32_v52  }
 0x17b   :  { %70 = vperm.xlu1 %658, %v35_v53  }
 0x17d   :  { %67 = vperm.xlu0 %657, %v34_v54  }
 0x1d1   :  { %v263_v55 = vpop.permute.xlu1 %262 }
 0x1d2   :  { %v279_v61 = vadd.f32 %v263_v55, %v202_v40 }
 0x1d3   :  { %v265_v56 = vpop.permute.xlu0 %264 }
 0x1d4   :  { %v280_v0 = vadd.f32 %v619_v37, %v265_v56 }
 0x1d5   :  { %v286_v57 = vpop.permute.xlu1 %285 }
 0x1d7   :  { %v288_v58 = vpop.permute.xlu0 %287 }
 0x1d8   :  { %v304_v1 = vadd.f32 %v288_v58, %v279_v61 }
 0x1d9   :  { %v271_v59 = vpop.permute.xlu1 %270 }
 0x1da   :  { %v283_v21 = vadd.f32 %v271_v59, %v218_v44 }
 0x1db   :  { %v261_v60 = vpop.permute.xlu0 %260 }
 0x1dc   :  { %v278_v62 = vadd.f32 %v261_v60, %v199_v38 }
 0x1dd   :  { %v267_v63 = vpop.permute.xlu1 %266 }
 0x1de   :  { %v303_v2 = vadd.f32 %v286_v57, %v278_v62  ;;  %v281_v8 = vadd.f32 %v620_v39, %v267_v63  ;;  %v323_v39 = vsub.s32 1, %v315_v10 }
 0x1df   :  { %v290_v3 = vpop.permute.xlu0 %289 }
 0x1e0   :  { %v309_v4 = vmax.f32 %v303_v2, %v304_v1  ;;  %v305_v5 = vadd.f32 %v290_v3, %v280_v0  ;;  %v324_v40 = vrot.slane %v862_v19, %v323_v39 }
 0x1e1   :  { %v269_v7 = vpop.permute.xlu1 %268 }
 0x1e2   :  { %v310_v9 = vmax.f32 %v309_v4, %v305_v5  ;;  %v282_v13 = vadd.f32 %v269_v7, %v215_v42  ;;  %v253_v4 = vpack.c.bf16 %v862_v19, %v862_v19 }
 0x1e3   :  { %v292_v11 = vpop.permute.xlu0 %291 }
 0x1e4   :  { %v306_v12 = vadd.f32 %v292_v11, %v281_v8  ;;  %v396_v5 = vrot.slane %v253_v4, 1 }
 0x1e5   :  { %v296_v18 = vpop.permute.xlu1 %295 }
 0x1e6   :  { %v311_v14 = vmax.f32 %v310_v9, %v306_v12  ;;  %v308_v23 = vadd.f32 %v296_v18, %v283_v21 }
 0x1e7   :  { %v294_v20 = vpop.permute.xlu0 %293 }
 0x1e8   :  { %v307_v22 = vadd.f32 %v294_v20, %v282_v13 }
 0x1ea   :  { %v312_v25 = vmax.f32 %v311_v14, %v307_v22 }
 0x1ec   :  { %v313_v26 = vmax.f32 %v312_v25, %v308_v23  ;;  %v470_v25 = vcvt.s32.f32 %v802_v16 }
 0x1ee   :  { %v318_v15 = vadd.f32 %v317_v24, %v313_v26 }
 0x1f0   :  { %v319_v27 = vmax.f32 %v318_v15, 0.0 }
 0x1f2   :  { %v320_v28 = vpack.c.bf16 %v319_v27, %v319_v27 }
 0x1f4   :  { %634 = vmatmul.mubr.msk.bf16.vlgmr.msra.gmra.mrb[0].mxu1 %vm325_vm11, %v320_v28 }
 0x1f5   :  { %641 = vmatprep.mubr.msk.bf16.mxu1 %vm727_vm10, %v724_v6  ;;  %vm534_vm10 = vcmask 25600  }
 0x1f6   :  { %v65_v29 = vpop.permute.xlu1 %64 }
 0x1f7   :  { %vm81_vm12 = vcmp.eq.s32.totalorder %v65_v29, %v802_v16 }
 0x1f8   :  { %v62_v30 = vpop.permute.xlu0 %61  ;;  %v578_v31 = vsel %vm81_vm12, 1.0, %v724_v6 }
 0x1f9   :  { %vm80_vm13 = vcmp.eq.s32.totalorder %v62_v30, %v802_v16 }
 0x1fa   :  { %v577_v32 = vsel %vm80_vm13, 1.0, %v724_v6  ;;  %v71_v33 = vpop.permute.xlu1 %70 }
 0x1fb   :  { %v112_v34 = vpack.c.bf16 %v578_v31, %v577_v32  ;;  %vm83_vm14 = vcmp.eq.s32.totalorder %v71_v33, %v802_v16 }
 0x1fc   :  { %v68_v35 = vpop.permute.xlu0 %67  ;;  %v580_v36 = vsel %vm83_vm14, 1.0, %v724_v6 }
 0x1fd   :  { %vm82_vm15 = vcmp.eq.s32.totalorder %v68_v35, %v802_v16  ;;  %625 = vmatprep.mubr.msk.bf16.mxu0 %vm142_vm5, %v112_v34 }
 0x1fe   :  { %v579_v37 = vsel %vm82_vm15, 1.0, %v724_v6 }
 0x1ff   :  { %v113_v38 = vpack.c.bf16 %v580_v36, %v579_v37 }
 0x201   :  { %626 = vmatmul.mubr.msk.bf16.gmra.mrb[8].mxu0 %vm142_vm5, %v113_v38 }
 0x2c7   :  { %v363_v41 = vpop.f32.mrb[0].mxu1 }
 0x2c8   :  { %v364_v42 = vadd.f32 %v363_v41, %v324_v40  ;;  %v635_v43 = vpop.f32.mrb[1].mxu1 }
 0x2c9   :  { %v366_v44 = vpop.f32.mrb[2].mxu1 }
 0x2ca   :  { %v372_v45 = vrot.slane %v364_v42, %v316_v17  ;;  %v376_v46 = vrot.slane %v364_v42, %v323_v39  ;;  %v636_v47 = vpop.f32.mrb[3].mxu1  ;;  %v471_v39 = vld [vmem:[%s943_s1] sm:$0x3]  ;;  %s730_s1 = smov [#allocation2]  }
 0x2cb   :  { %v472_v41 = vcvt.s32.f32 %v471_v39  ;;  %s547_s13 = sshll.u32 %s730_s1, 4  ;;  %s548_s13 = int_to_ptr.vmem [resolvable:$true] %s547_s13 }
 0x2cc   :  { %381 = vrot.lane.b32.xlu1 %v376_v46, %s725_s2  ;;  %379 = vrot.lane.b32.xlu0 %v372_v45, %s725_s2  ;;  %s675_s14 = scalar_lea.vmem %s548_s13, 32  ;;  %p680_p1 = scmp.lt.s32.totalorder %s548_s13, %s548_s13 }
 0x2cd   :  { %p676_p0 = scmp.ne.s32.totalorder %s548_s13, %s675_s14  ;;  %p681_p2 = scmp.lt.s32.totalorder %s675_s14, %s675_s14 }
 0x2cf   :  { %p682_p3 = por %p681_p2, %p680_p1 }
 0x2d1   :  { %p683_p4 = pnand %p682_p3, %p676_p0 }
 0x2d4   :  { %v627_v48 = vpop.f32.mrb[8].mxu0 }
 0x2d5   :  { %v231_v49 = vpop.f32.mrb[9].mxu0 }
 0x2d6   :  { %v628_v50 = vpop.f32.mrb[10].mxu0 }
 0x2d7   :  { %v234_v51 = vpop.f32.mrb[11].mxu0 }
 0x33e   :  { %v382_v52 = vpop.permute.xlu1 %381  ;;  %v380_v53 = vpop.permute.xlu0 %379 }
 0x33f   :  { %v387_v54 = vadd.f32 %v627_v48, %v382_v52  ;;  %v388_v55 = vadd.f32 %v628_v50, %v382_v52  ;;  %v385_v56 = vadd.f32 %v380_v53, %v231_v49  ;;  %v386_v57 = vadd.f32 %v380_v53, %v234_v51 }
 0x341   :  { %663 = vtanh.f32 %v387_v54 }
 0x342   :  { %665 = vtanh.f32 %v388_v55 }
 0x343   :  { %667 = vtanh.f32 %v385_v56 }
 0x344   :  { %669 = vtanh.f32 %v386_v57 }
 0x34b   :  { %v664_v58 = vpop.eup %663 }
 0x34c   :  { %v666_v59 = vpop.eup %665 }
 0x34d   :  { %v668_v60 = vpop.eup %667  ;;  %v394_v61 = vpack.c.bf16 %v666_v59, %v664_v58 }
 0x34e   :  { %v670_v62 = vpop.eup %669 }
 0x34f   :  { %401 = vrot.lane.b32.xlu1 %v394_v61, %s728_s3  ;;  %v393_v63 = vpack.c.bf16 %v670_v62, %v668_v60 }
 0x351   :  { %399 = vrot.lane.b32.xlu0 %v393_v63, %s728_s3 }
 0x3c1   :  { %v402_v2 = vpop.permute.xlu1 %401 }
 0x3c2   :  { %v410_v3 = vsel %vm325_vm11, %v402_v2, 0 }
 0x3c3   :  { %v400_v0 = vpop.permute.xlu0 %399 }
 0x3c4   :  { %v407_v1 = vsel %vm325_vm11, %v400_v0, 0 }
 0x3c5   :  { %638 = vmatpush3.bf16.xpose.msra.mxu1 %v407_v1 }
 0x3c6   :  { %639 = vmatprep.subr.bf16.mxu1 %v724_v6 }
 0x3cd   :  { %640 = vmatpush3.bf16.xpose.msra.mxu1 %v410_v3 }
 0x3d4   :  { %642 = vmatmul.mubr.msk.bf16.vlgmr.msra.gmra.mrb[4].mxu1 %vm325_vm11, %v396_v5 }
 0x4a7   :  { %v446_v7 = vpop.f32.mrb[4].mxu1 }
 0x4a8   :  { %v453_v8 = vrot.slane %v446_v7, 7  ;;  %v643_v9 = vpop.f32.mrb[5].mxu1 }
 0x4a9   :  { %v449_v10 = vpop.f32.mrb[6].mxu1 }
 0x4aa   :  { %454 = vrot.lane.b32.xlu0 %v453_v8, %s729_s10  ;;  %v644_v11 = vpop.f32.mrb[7].mxu1 }
 0x51c   :  { %v455_v12 = vpop.permute.xlu0 %454 }
 0x51d   :  { %v457_v6 = vsel %vm161_vm0, %v446_v7, %v455_v12 }
 0x51e   :  { %v459_v13 = vsel %vm458_vm1, %v457_v6, -inf }
 0x51f   :  { %460 = vmax.xlane.f32.xlu1 %v459_v13 }
 0x5ac   :  { %v461_v14 = vpop.xlane.xlu1 %460 }
 0x5ad   :  { %v462_v17 = vsub.f32 %v457_v6, %v461_v14 }
 0x5af   :  { %v463_v18 = vmul.f32 1.442695, %v462_v17 }
 0x5b1   :  { %671 = vpow2.f32 %v463_v18 }
 0x5bb   :  { %v672_v19 = vpop.eup %671 }
 0x5bc   :  { %v465_v20 = vsel %vm458_vm1, %v672_v19, 0.0 }
 0x5bd   :  { %466 = vadd.xlane.f32.xlu0 %v465_v20 }
 0x64a   :  { %v467_v21 = vpop.xlane.xlu0 %466 }
 0x64b   :  { %673 = vrcp.f32 %v467_v21 }
 0x655   :  { %v674_v22 = vpop.eup %673 }
 0x656   :  { %v469_v23 = vmul.f32 %v674_v22, %v672_v19 }
 0x658   :  { %v473_v24 = vsel %vm458_vm1, %v469_v23, -inf }
 0x659   :  { %474 = vmax.xlane.f32.xlu0 %v473_v24 }
 0x6e6   :  { %v475_v26 = vpop.xlane.xlu0 %474 }
 0x6e7   :  { %vm476_vm0 = vcmp.eq.f32.partialorder %v469_v23, %v475_v26 }
 0x6e8   :  { %v477_v15 = vsel %vm476_vm0, %v470_v25, 16.0 }
 0x6e9   :  { %v478_v27 = vsel %vm458_vm1, %v477_v15, inf }
 0x6ea   :  { %479 = vmin.xlane.f32.xlu1 %v478_v27 }
 0x777   :  { %v480_v28 = vpop.xlane.xlu1 %479 }
 0x778   :  { %vm481_vm2 = vcmp.eq.f32.partialorder %v470_v25, %v480_v28 }
 0x779   :  { %v486_v29 = vsel %vm481_vm2, -1.0, %v469_v23  ;;  %v482_v44 = vsel %vm481_vm2, %v472_v41, 0.0 }
 0x77a   :  { %v487_v30 = vsel %vm458_vm1, %v486_v29, -inf  ;;  %v483_v45 = vsel %vm458_vm1, %v482_v44, 0.0 }
 0x77b   :  { %488 = vmax.xlane.f32.xlu0 %v487_v30 }
 0x808   :  { %v489_v31 = vpop.xlane.xlu0 %488 }
 0x809   :  { %vm490_vm3 = vcmp.eq.f32.partialorder %v486_v29, %v489_v31  ;;  %v529_v48 = vsel %vm528_vm7, %v475_v26, %v489_v31 }
 0x80a   :  { %v491_v32 = vsel %vm490_vm3, %v470_v25, 16.0 }
 0x80b   :  { %v492_v33 = vsel %vm458_vm1, %v491_v32, inf }
 0x80c   :  { %493 = vmin.xlane.f32.xlu1 %v492_v33 }
 0x899   :  { %v494_v16 = vpop.xlane.xlu1 %493 }
 0x89a   :  { %vm495_vm4 = vcmp.eq.f32.partialorder %v470_v25, %v494_v16 }
 0x89b   :  { %v500_v34 = vsel %vm495_vm4, -1.0, %v486_v29  ;;  %v496_v54 = vsel %vm495_vm4, %v472_v41, 0.0 }
 0x89c   :  { %v501_v35 = vsel %vm458_vm1, %v500_v34, -inf  ;;  %v497_v55 = vsel %vm458_vm1, %v496_v54, 0.0 }
 0x89d   :  { %502 = vmax.xlane.f32.xlu0 %v501_v35 }
 0x92a   :  { %v503_v36 = vpop.xlane.xlu0 %502 }
 0x92b   :  { %vm504_vm5 = vcmp.eq.f32.partialorder %v500_v34, %v503_v36  ;;  %v531_v49 = vsel %vm530_vm8, %v529_v48, %v503_v36 }
 0x92c   :  { %v505_v37 = vsel %vm504_vm5, %v470_v25, 16.0 }
 0x92d   :  { %v506_v38 = vsel %vm458_vm1, %v505_v37, inf }
 0x92e   :  { %507 = vmin.xlane.f32.xlu1 %v506_v38 }
 0x9bb   :  { %v508_v40 = vpop.xlane.xlu1 %507 }
 0x9bc   :  { %vm509_vm6 = vcmp.eq.f32.partialorder %v470_v25, %v508_v40 }
 0x9bd   :  { %v514_v42 = vsel %vm509_vm6, -1.0, %v500_v34  ;;  %v510_v46 = vsel %vm509_vm6, %v472_v41, 0.0 }
 0x9be   :  { %v515_v43 = vsel %vm458_vm1, %v514_v42, -inf  ;;  %v511_v47 = vsel %vm458_vm1, %v510_v46, 0.0 }
 0x9bf   :  { %516 = vmax.xlane.f32.xlu0 %v515_v43 }
 0x9c3   :  { %484 = vadd.xlane.f32.xlu0 %v483_v45 }
 0x9c7   :  { %512 = vadd.xlane.f32.xlu0 %v511_v47 }
 0xa4c   :  { %v517_v50 = vpop.xlane.xlu0 %516 }
 0xa4d   :  { %vm518_vm11 = vcmp.eq.f32.partialorder %v514_v42, %v517_v50  ;;  %v533_v51 = vsel %vm532_vm9, %v531_v49, %v517_v50 }
 0xa4e   :  { %v519_v52 = vsel %vm518_vm11, %v470_v25, 16.0  ;;  %535 = vst.msk [vmem:[#allocation2] sm:$0x3] %vm534_vm10, %v533_v51 }
 0xa4f   :  { %v520_v53 = vsel %vm458_vm1, %v519_v52, inf }
 0xa50   :  { %521 = vmin.xlane.f32.xlu1 %v520_v53 }
 0xa54   :  { %498 = vadd.xlane.f32.xlu1 %v497_v55 }
 0xadd   :  { %v522_v56 = vpop.xlane.xlu1 %521 }
 0xade   :  { %vm523_vm12 = vcmp.eq.f32.partialorder %v470_v25, %v522_v56 }
 0xadf   :  { %v524_v57 = vsel %vm523_vm12, %v472_v41, 0.0 }
 0xae0   :  { %v525_v58 = vsel %vm458_vm1, %v524_v57, 0.0 }
 0xae1   :  { %526 = vadd.xlane.f32.xlu1 %v525_v58 }
 0xae2   :  { %686 = shalt.err (!%p683_p4)
}
 0xae3   :  { %s687_s2 = scalar_lea.hbm %s946_s4, 32 }
 0xae4   :  { %p688_p5 = scmp.ne.s32.totalorder %s946_s4, %s687_s2  ;;  %p691_p6 = scmp.lt.u32.totalorder %s687_s2, %s946_s4 }
 0xae6   :  { %p693_p7 = pnand %p691_p6, %p688_p5 }
 0xae8   :  { %696 = shalt.err (!%p693_p7)
}
 0xae9   :  { %550 = dma.vmem_to_hbm [thread:$0]  %s548_s13, 32, %s946_s4, [#allocation3]   ;;  %v485_v59 = vpop.xlane.xlu0 %484  ;;  %v499_v60 = vpop.xlane.xlu1 %498 }
 0xaea   :  { %v536_v61 = vsel %vm528_vm7, %v485_v59, %v499_v60  ;;  %s731_s23 = smov [#allocation4]  }
 0xaeb   :  { %s557_s24 = sshll.u32 %s731_s23, 4  ;;  %s558_s24 = int_to_ptr.vmem [resolvable:$true] %s557_s24 }
 0xaec   :  { %s697_s25 = scalar_lea.vmem %s558_s24, 32  ;;  %p702_p9 = scmp.lt.s32.totalorder %s558_s24, %s558_s24 }
 0xaed   :  { %v513_v62 = vpop.xlane.xlu0 %512  ;;  %p698_p8 = scmp.ne.s32.totalorder %s558_s24, %s697_s25  ;;  %p703_p10 = scmp.lt.s32.totalorder %s697_s25, %s697_s25 }
 0xaee   :  { %v537_v0 = vsel %vm530_vm8, %v536_v61, %v513_v62 }
 0xaef   :  { %p704_p11 = por %p703_p10, %p702_p9 }
 0xaf1   :  { %p705_p12 = pnand %p704_p11, %p698_p8 }
 0xb6e   :  { %v527_v63 = vpop.xlane.xlu1 %526 }
 0xb6f   :  { %v538_v1 = vsel %vm532_vm9, %v537_v0, %v527_v63 }
 0xb70   :  { %v646_v2 = vtrunc.f32 %v538_v1 }
 0xb72   :  { %v647_v3 = vcvt.f32.s32 %v646_v2 }
 0xb74   :  { %540 = vst.msk [vmem:[#allocation4] sm:$0x3] %vm534_vm10, %v647_v3 }
 0xb75   :  { %708 = shalt.err (!%p705_p12)
}
 0xb76   :  { %s709_s27 = scalar_lea.hbm %s947_s5, 32 }
 0xb77   :  { %p710_p13 = scmp.ne.s32.totalorder %s947_s5, %s709_s27  ;;  %p713_p0 = scmp.lt.u32.totalorder %s709_s27, %s947_s5 }
 0xb79   :  { %p715_p1 = pnand %p713_p0, %p710_p13 }
 0xb7b   :  { %718 = shalt.err (!%p715_p1)
}
 0xb7c   :  { %560 = dma.vmem_to_hbm [thread:$0]  %s558_s24, 32, %s947_s5, [#allocation5]  }
 0xb7d   :  { %719 = dma.done.wait [#allocation3], 32  }
 0xb7e   :  { %720 = vsyncadd [#allocation3], 4294967264 }
 0xb7f   :  { %721 = dma.done.wait [#allocation5], 32  }
 0xb80   :  { %722 = vsyncadd [#allocation5], 4294967264 }
 0xb81   :  { %567 = vsyncpa [#allocation3], 1 }
 0xb82   :  { %568 = vsyncpa [#allocation5], 1 }

</bundles_post_ra>
